<compile_context>
chip_gen: v7x
topology: tpu7x:2x2x1
jax: 0.10.0
libtpu: 0.0.40
codegen_flags: <defaults>
</compile_context>

<pallas_src>
import functools

import jax
import jax.numpy as jnp
from jax import lax
from jax.experimental import pallas as pl
from jax.experimental.pallas import tpu as pltpu

TEMPERATURE = 0.5
SCALE_BY_TEMPERATURE = True
_SHIFT = 1.0 / TEMPERATURE   # fixed softmax shift; valid because ||f||=1 => |logit| <= 1/T
_EPS = 1e-12                 # F.normalize eps
_TQ_TARGET = 512             # query-tile rows (parallel / megacore axis)
_TK_TARGET = 512             # key-tile rows   (streamed / arbitrary axis)


def _supcon_kernel(q_ref, kT_ref, lab_q_ref, lab_k_ref, den_ref, s1_ref):
    """Per (query-tile, key-tile) step: accumulate exp-sum and positive-logit sum."""
    ki = pl.program_id(1)

    @pl.when(ki == 0)
    def _():
        den_ref[...] = jnp.zeros_like(den_ref)
        s1_ref[...] = jnp.zeros_like(s1_ref)

    # MXU-native matmul: bf16 (tq,D) x (D,tk) operands, f32 accumulation.
    # 1/T is already folded into the pre-normalized query operand.
    raw = jnp.dot(q_ref[...], kT_ref[...],
                  preferred_element_type=jnp.float32)          # (tq, tk)

    # Softmax denominator with a fixed shift (no running max needed: inputs are
    # L2-normalized so raw <= ~1/T and exp(raw - 1/T) cannot overflow).
    den_ref[...] += jnp.sum(jnp.exp(raw - _SHIFT), axis=1, keepdims=True)

    # Sum of positive logits via a single select on the label-equality compare
    # (includes the self term; it is removed analytically at finalize).
    eq = lab_q_ref[...] == lab_k_ref[...]                      # (tq,1)==(1,tk) -> bool
    s1_ref[...] += jnp.sum(jnp.where(eq, raw, 0.0), axis=1, keepdims=True)


def _divisor_tile(n, target, mult):
    """Largest t <= target with t % mult == 0 and n % t == 0, else None."""
    t = (min(target, n) // mult) * mult
    while t >= mult:
        if n % t == 0:
            return t
        t -= mult
    return None


def supcon_loss(features, labels):
    B, D = features.shape
    inv_t = 1.0 / TEMPERATURE

    # ---- one-time O(B*D) preprocessing in plain JAX (f32 -> bf16) -----------
    f32 = features.astype(jnp.float32)
    fnorm = f32 * lax.rsqrt(
        jnp.maximum(jnp.sum(f32 * f32, axis=1, keepdims=True), _EPS * _EPS))
    q_bf = (fnorm * inv_t).astype(jnp.bfloat16)    # query operand, 1/T folded in
    k_bf = fnorm.astype(jnp.bfloat16)              # key operand
    kT_bf = k_bf.T                                 # (D,B): MXU-native (K,N) layout

    lab = labels.astype(jnp.int32)
    lab_col = lab.reshape(B, 1)
    lab_row = lab.reshape(1, B)

    # Per-row diagonal logit (self-similarity / T), recomputed from the SAME
    # bf16 operands the MXU consumes (exact bf16 products, f32 accumulation),
    # so it matches the in-matrix diagonal to ~ulp level.
    diag = jnp.sum(q_bf.astype(jnp.float32) * k_bf.astype(jnp.float32), axis=1)

    # Positives per row (excluding self): O(B log B), no (B,B) mask anywhere.
    slab = jnp.sort(lab)
    counts = (jnp.searchsorted(slab, lab, side='right')
              - jnp.searchsorted(slab, lab, side='left'))
    num_pos = counts.astype(jnp.float32) - 1.0

    # ---- tiling --------------------------------------------------------------
    # tq: multiple of 8, capped at B//2 so the parallel axis has >= 2 tiles
    # (v7x megacore); tk: multiple of 128 (lane / MXU-N constraint).
    tq = _divisor_tile(B, min(_TQ_TARGET, max(B // 2, 8)), 8) or B
    tk = _divisor_tile(B, _TK_TARGET, 128) or B
    # TODO(synk): B that is not a multiple of 128 falls back to a single
    # full-width key tile; very large such B would need padding + key-validity
    # masking instead.

    itemsize_bf16 = 2
    cost = pl.CostEstimate(
        flops=2 * B * B * D,
        transcendentals=B * B,
        bytes_accessed=(B * D * itemsize_bf16                    # query tiles (once)
                        + (B // tq) * B * D * itemsize_bf16       # keys re-streamed per query tile
                        + (B // tq) * B * 4 + B * 4               # label streams
                        + 2 * B * 4),                             # outputs
    )

    den, s1 = pl.pallas_call(
        _supcon_kernel,
        out_shape=(jax.ShapeDtypeStruct((B, 1), jnp.float32),
                   jax.ShapeDtypeStruct((B, 1), jnp.float32)),
        grid_spec=pltpu.PrefetchScalarGridSpec(
            num_scalar_prefetch=0,
            grid=(B // tq, B // tk),
            in_specs=[
                pl.BlockSpec((tq, D), lambda qi, ki: (qi, 0)),   # query tile (bf16, pre-scaled)
                pl.BlockSpec((D, tk), lambda qi, ki: (0, ki)),   # key tile, (K,N) layout
                pl.BlockSpec((tq, 1), lambda qi, ki: (qi, 0)),   # labels (column)
                pl.BlockSpec((1, tk), lambda qi, ki: (0, ki)),   # labels (row)
            ],
            out_specs=[
                pl.BlockSpec((tq, 1), lambda qi, ki: (qi, 0)),   # exp-sum accumulator
                pl.BlockSpec((tq, 1), lambda qi, ki: (qi, 0)),   # pos-logit-sum accumulator
            ],
        ),
        compiler_params=pltpu.CompilerParams(
            dimension_semantics=("parallel", "arbitrary"),
            vmem_limit_bytes=32 * 1024 * 1024,
        ),
        cost_estimate=cost,
    )(q_bf, kT_bf, lab_col, lab_row)

    den = den[:, 0]
    s1 = s1[:, 0]

    # ---- tiny O(B) finalize in plain JAX -------------------------------------
    # Drop the self term analytically; per-row loss; masked mean over rows with
    # at least one positive (matches the torch boolean-index + mean).
    den_excl = den - jnp.exp(diag - _SHIFT)          # sum_{j!=i} exp(raw_ij - shift)
    lse = _SHIFT + jnp.log(den_excl)                 # log sum_{j!=i} exp(raw_ij)
    row = (s1 - diag) - num_pos * lse                # sum_{pos,j!=i} log_prob_ij
    valid = num_pos > 0
    per_row = jnp.where(valid, -row / jnp.where(valid, num_pos, 1.0), 0.0)
    # TODO(synk): torch raises ValueError on NaN log_probs / empty valid set;
    # there is no in-kernel exception path (NaN propagates instead).
    loss = jnp.sum(per_row) / jnp.sum(valid.astype(jnp.float32))
    if SCALE_BY_TEMPERATURE:
        loss = loss * TEMPERATURE
    return loss


def supcon_loss_ref(features, labels):
    # pure-JAX f32 reference (mirrors the torch module exactly)
    f = features.astype(jnp.float32)
    f = f / jnp.maximum(jnp.linalg.norm(f, axis=1, keepdims=True), 1e-12)
    B = f.shape[0]
    mask = (labels[:, None] == labels[None, :]).astype(jnp.float32)
    logits = f @ f.T / TEMPERATURE
    logits = logits - jnp.max(logits, axis=1, keepdims=True)
    exp_logits = jnp.exp(logits)
    logits_mask = 1.0 - jnp.eye(B, dtype=jnp.float32)
    pos = mask * logits_mask
    neg = 1.0 - mask
    num_pos = jnp.sum(pos, axis=1)
    denom = jnp.sum(exp_logits * neg, axis=1, keepdims=True) + \
            jnp.sum(exp_logits * pos, axis=1, keepdims=True)
    log_probs = logits - jnp.log(denom)
    row = jnp.sum(log_probs * pos, axis=1)
    valid = num_pos > 0
    per_row = jnp.where(valid, -row / jnp.where(valid, num_pos, 1.0), 0.0)
    loss = jnp.sum(per_row) / jnp.sum(valid.astype(jnp.float32))
    if SCALE_BY_TEMPERATURE:
        loss = loss * TEMPERATURE
    return loss


if __name__ == "__main__":
    key = jax.random.PRNGKey(0)
    kf, kl = jax.random.split(key)
    B, D = 64, 128
    features = jax.random.normal(kf, (B, D), dtype=jnp.float32)
    labels = jax.random.randint(kl, (B,), 0, 8, dtype=jnp.int32)

    loss = jax.jit(supcon_loss)(features, labels)
    jax.block_until_ready(loss)

    ref = supcon_loss_ref(features, labels)
    # bf16 MXU operands (f32 accumulation) => loosen tolerance vs the f32 ref.
    assert bool(jnp.isfinite(loss)), loss
    assert jnp.allclose(loss, ref, rtol=2e-2, atol=2e-2), (loss, ref)
    print("KERNEL_OK")
</pallas_src>

<mosaic_0001>
module attributes {stable_mosaic.version = 11 : i64} {
  func.func @_supcon_kernel(%arg0: i32, %arg1: i32, %arg2: memref<32x128xbf16, #tpu.memory_space<vmem>>, %arg3: memref<128x64xbf16, #tpu.memory_space<vmem>>, %arg4: memref<32x1xi32, #tpu.memory_space<vmem>>, %arg5: memref<1x64xi32, #tpu.memory_space<vmem>>, %arg6: memref<32x1xf32, #tpu.memory_space<vmem>>, %arg7: memref<32x1xf32, #tpu.memory_space<vmem>>) attributes {dimension_semantics = [#tpu.dimension_semantics<parallel>, #tpu.dimension_semantics<arbitrary>], iteration_bounds = array<i64: 2, 1>, scalar_prefetch = 0 : i64, scratch_operands = 0 : i64, tpu.core_type = #tpu.core_type<tc>, window_params = [{transform_indices = @transform_0, window_bounds = array<i64: 32, 128>}, {transform_indices = @transform_1, window_bounds = array<i64: 128, 64>}, {transform_indices = @transform_2, window_bounds = array<i64: 32, 1>}, {transform_indices = @transform_3, window_bounds = array<i64: 1, 64>}, {transform_indices = @transform_4, window_bounds = array<i64: 32, 1>}, {transform_indices = @transform_5, window_bounds = array<i64: 32, 1>}]} {
    %c0_i32 = arith.constant 0 : i32
    %0 = arith.cmpi eq, %arg1, %c0_i32 : i32
    %1 = arith.extui %0 : i1 to i32
    %c0_i32_0 = arith.constant 0 : i32
    %2 = arith.cmpi ne, %1, %c0_i32_0 : i32
    scf.if %2 {
      %cst_20 = arith.constant 0.000000e+00 : f32
      %26 = vector.broadcast %cst_20 : f32 to vector<32x1xf32>
      %c0_21 = arith.constant 0 : index
      %c0_22 = arith.constant 0 : index
      %27 = vector.load %arg6[%c0_21, %c0_22] : memref<32x1xf32, #tpu.memory_space<vmem>>, vector<32x1xf32>
      tpu.vector_store %arg6[%c0_21, %c0_22], %26 {strides = array<i32>} : memref<32x1xf32, #tpu.memory_space<vmem>>, vector<32x1xf32>,
      %cst_23 = arith.constant 0.000000e+00 : f32
      %28 = vector.broadcast %cst_23 : f32 to vector<32x1xf32>
      %c0_24 = arith.constant 0 : index
      %c0_25 = arith.constant 0 : index
      %29 = vector.load %arg7[%c0_24, %c0_25] : memref<32x1xf32, #tpu.memory_space<vmem>>, vector<32x1xf32>
      tpu.vector_store %arg7[%c0_24, %c0_25], %28 {strides = array<i32>} : memref<32x1xf32, #tpu.memory_space<vmem>>, vector<32x1xf32>,
    } else {
    }
    %c0 = arith.constant 0 : index
    %c0_1 = arith.constant 0 : index
    %3 = vector.load %arg2[%c0, %c0_1] : memref<32x128xbf16, #tpu.memory_space<vmem>>, vector<32x128xbf16>
    %c0_2 = arith.constant 0 : index
    %c0_3 = arith.constant 0 : index
    %4 = vector.load %arg3[%c0_2, %c0_3] : memref<128x64xbf16, #tpu.memory_space<vmem>>, vector<128x64xbf16>
    %cst = arith.constant dense<0.000000e+00> : vector<32x64xf32>
    %5 = tpu.matmul %3, %4, %cst {dimension_numbers = #tpu.dot_dimension_numbers<[1], [0], [0], [1], [0, 0, 1, 1], [], []>} : vector<32x128xbf16>, vector<128x64xbf16>, vector<32x64xf32> -> vector<32x64xf32>
    %c0_4 = arith.constant 0 : index
    %c0_5 = arith.constant 0 : index
    %6 = vector.load %arg6[%c0_4, %c0_5] : memref<32x1xf32, #tpu.memory_space<vmem>>, vector<32x1xf32>
    %cst_6 = arith.constant 2.000000e+00 : f32
    %7 = vector.broadcast %cst_6 : f32 to vector<32x64xf32>
    %8 = arith.subf %5, %7 : vector<32x64xf32>
    %9 = math.exp %8 : vector<32x64xf32>
    %cst_7 = arith.constant dense<0.000000e+00> : vector<32xf32>
    %10 = vector.multi_reduction <add>, %9, %cst_7 [1] : vector<32x64xf32> to vector<32xf32>
    %11 = vector.shape_cast %10 : vector<32xf32> to vector<32x1xf32>
    %12 = arith.addf %6, %11 : vector<32x1xf32>
    %c0_8 = arith.constant 0 : index
    %c0_9 = arith.constant 0 : index
    %13 = vector.load %arg6[%c0_8, %c0_9] : memref<32x1xf32, #tpu.memory_space<vmem>>, vector<32x1xf32>
    tpu.vector_store %arg6[%c0_8, %c0_9], %12 {strides = array<i32>} : memref<32x1xf32, #tpu.memory_space<vmem>>, vector<32x1xf32>,
    %c0_10 = arith.constant 0 : index
    %c0_11 = arith.constant 0 : index
    %14 = vector.load %arg4[%c0_10, %c0_11] : memref<32x1xi32, #tpu.memory_space<vmem>>, vector<32x1xi32>
    %c0_12 = arith.constant 0 : index
    %c0_13 = arith.constant 0 : index
    %15 = vector.load %arg5[%c0_12, %c0_13] : memref<1x64xi32, #tpu.memory_space<vmem>>, vector<1x64xi32>
    %16 = vector.broadcast %14 : vector<32x1xi32> to vector<32x64xi32>
    %17 = vector.broadcast %15 : vector<1x64xi32> to vector<32x64xi32>
    %18 = arith.cmpi eq, %16, %17 : vector<32x64xi32>
    %c0_14 = arith.constant 0 : index
    %c0_15 = arith.constant 0 : index
    %19 = vector.load %arg7[%c0_14, %c0_15] : memref<32x1xf32, #tpu.memory_space<vmem>>, vector<32x1xf32>
    %cst_16 = arith.constant 0.000000e+00 : f32
    %20 = vector.broadcast %cst_16 : f32 to vector<32x64xf32>
    %21 = arith.select %18, %5, %20 : vector<32x64xi1>, vector<32x64xf32>
    %cst_17 = arith.constant dense<0.000000e+00> : vector<32xf32>
    %22 = vector.multi_reduction <add>, %21, %cst_17 [1] : vector<32x64xf32> to vector<32xf32>
    %23 = vector.shape_cast %22 : vector<32xf32> to vector<32x1xf32>
    %24 = arith.addf %19, %23 : vector<32x1xf32>
    %c0_18 = arith.constant 0 : index
    %c0_19 = arith.constant 0 : index
    %25 = vector.load %arg7[%c0_18, %c0_19] : memref<32x1xf32, #tpu.memory_space<vmem>>, vector<32x1xf32>
    tpu.vector_store %arg7[%c0_18, %c0_19], %24 {strides = array<i32>} : memref<32x1xf32, #tpu.memory_space<vmem>>, vector<32x1xf32>,
    return
  }
  func.func @transform_0(%arg0: i32, %arg1: i32) -> (i32, i32) {
    %c0_i32 = arith.constant 0 : i32
    %c0_i32_0 = arith.constant 0 : i32
    return %arg0, %c0_i32 : i32, i32
  }
  func.func @transform_1(%arg0: i32, %arg1: i32) -> (i32, i32) {
    %c0_i32 = arith.constant 0 : i32
    %c0_i32_0 = arith.constant 0 : i32
    return %c0_i32, %arg1 : i32, i32
  }
  func.func @transform_2(%arg0: i32, %arg1: i32) -> (i32, i32) {
    %c0_i32 = arith.constant 0 : i32
    %c0_i32_0 = arith.constant 0 : i32
    return %arg0, %c0_i32 : i32, i32
  }
  func.func @transform_3(%arg0: i32, %arg1: i32) -> (i32, i32) {
    %c0_i32 = arith.constant 0 : i32
    %c0_i32_0 = arith.constant 0 : i32
    return %c0_i32, %arg1 : i32, i32
  }
  func.func @transform_4(%arg0: i32, %arg1: i32) -> (i32, i32) {
    %c0_i32 = arith.constant 0 : i32
    %c0_i32_0 = arith.constant 0 : i32
    return %arg0, %c0_i32 : i32, i32
  }
  func.func @transform_5(%arg0: i32, %arg1: i32) -> (i32, i32) {
    %c0_i32 = arith.constant 0 : i32
    %c0_i32_0 = arith.constant 0 : i32
    return %arg0, %c0_i32 : i32, i32
  }
}

</mosaic_0001>

<bundles_post_ra>
// kernel: custom-call
= control target key start
LH: loop header
LB: loop body
LE: loop exit
PB: predicated region body
PF: predicated region fallthrough
CT: control target
= control target key end

     0   :  { %s6_s0 = inlined_call_operand.vmem [shape: u32[64], index: 0, kind: output, shape index: {}]  }

// kernel: supcon_loss.1
= control target key start
LH: loop header
LB: loop body
LE: loop exit
PB: predicated region body
PF: predicated region fallthrough
CT: control target
= control target key end

     0   :  { %s843_s18 = smov 0   ;;  %s845_s19 = smov 0   ;;  %s966_s0 = inlined_call_operand.vmem [shape: bf16[64,128], index: 0, kind: input, shape index: {}]   ;;  %s967_s1 = inlined_call_operand.vmem [shape: bf16[128,64], index: 1, kind: input, shape index: {}]   ;;  %s968_s2 = inlined_call_operand.vmem [shape: s32[64,1], index: 2, kind: input, shape index: {}]   ;;  %s969_s3 = inlined_call_operand.vmem [shape: s32[1,64], index: 3, kind: input, shape index: {}]   ;;  %s970_s4 = inlined_call_operand.vmem [shape: f32[64,1], index: 4, kind: output, shape index: {0}]   ;;  %s971_s5 = inlined_call_operand.vmem [shape: f32[64,1], index: 5, kind: output, shape index: {1}]  }
   0x1   :  { %s847_s20 = smov 0  }
   0x2 LB: > { %s28_s21 = sadd.s32 1, %s805_s19  ;;  %p685_p0 = scmp.ge.s32.totalorder %s809_s20, 1  ;;  %s809_s20 = sphi %s847_s20, %s16_s20   ;;  %s805_s19 = sphi %s845_s19, %s973_s19   ;;  %s801_s18 = sphi %s843_s18, %s972_s18  }
   0x3   : > { %p30_p1 = scmp.ge.s32.totalorder %s28_s21, 2  ;;  %p231_p2 = scmp.lt.s32.totalorder %s809_s20, 3 }
   0x5   : > { %s975_s21 = smov (%p30_p1, %s28_s21), 0  ;;  %p232_p3 = pnand %p685_p0, %p231_p2 }
   0x6   : > { %v769_v0 = vld [vmem:[%s967_s1] sm:$0xff] (!%p232_p3)   ;;  %s686_s24 = sshll.u32 (!%p232_p3), %s801_s18, 2  ;;  %v770_v1 = vld [vmem:[%s967_s1 + $0x8] sm:$0xff] (!%p232_p3)   ;;  %v811_v2 = vmov (!%p232_p3), 0   ;;  %v771_v3 = vld [vmem:[%s967_s1 + $0x10] sm:$0xff] (!%p232_p3)   ;;  %vm312_vm0 = vcmask (!%p232_p3), 7168  }
   0x7   : > { %235 = sbr.rel (%p232_p3) target bundleno = 421 (0x1a5), region = 36  ;;  %p277_p4 = scmp.lt.s32.totalorder (!%p232_p3), %s686_s24, 7  ;;  %721 = vmatprep.subr.bf16.mxu0 (!%p232_p3), %v769_v0  ;;  %768 = vset.pattern.permute.xlu1 (!%p232_p3), %v811_v2  ;;  %v772_v4 = vld [vmem:[%s967_s1 + $0x18] sm:$0xff] (!%p232_p3)   ;;  %v773_v8 = vld [vmem:[%s967_s1 + $0x20] sm:$0xff] (!%p232_p3)   ;;  %v774_v11 = vld [vmem:[%s967_s1 + $0x28] sm:$0xff] (!%p232_p3)   ;;  %v812_v15 = vmov (!%p232_p3), 0.0  }
   0x8   : > { %722 = vmatpush3.bf16.msra.mxu0 (!%p232_p3), %v769_v0  ;;  %767 = vset.pattern.permute.xlu0 (!%p232_p3), %v811_v2  ;;  %v775_v12 = vld [vmem:[%s967_s1 + $0x30] sm:$0xff] (!%p232_p3)   ;;  %v776_v13 = vld [vmem:[%s967_s1 + $0x38] sm:$0xff] (!%p232_p3)   ;;  %v708_v17 = vld [vmem:[%s969_s3] ss:$0 sm:$0xff] (!%p232_p3)  ;;  %vm466_vm3 = vcmask (!%p232_p3), 523264  }
   0x9   : > { %723 = vmatprep.subr.bf16.mxu0 (!%p232_p3), %v770_v1 }
   0xc   : > { %724 = vmatpush3.bf16.msra.mxu0 (!%p232_p3), %v770_v1 }
   0xd   : > { %725 = vmatprep.subr.bf16.mxu0 (!%p232_p3), %v771_v3 }
   0xe   : > { %s977_s24 = smov (!%p277_p4, %s686_s24), 7 }
   0xf   : > { %s687_s29 = sshll.u32 %s977_s24, 2  ;;  %s873_s8 = sshll.u32 %s977_s24, 3 }
  0x10   : > { %s280_s7 = scalar_lea.vmem %s966_s0, %s687_s29  ;;  %s290_s13 = scalar_lea.vmem %s968_s2, %s873_s8  ;;  %726 = vmatpush3.bf16.msra.mxu0 %v771_v3 }
  0x11   : > { %v777_v5 = vld [vmem:[%s280_s7] sm:$0xff]   ;;  %v490_v6 = vld [vmem:[%s290_s13 + $0x10] sm:$0xff]  ;;  %727 = vmatprep.subr.bf16.mxu0 %v772_v4  ;;  %v491_v9 = vld [vmem:[%s290_s13 + $0x18] sm:$0xff]  ;;  %s898_s27 = scalar_lea.vmem %s970_s4, %s873_s8  ;;  %s904_s30 = scalar_lea.vmem %s971_s5, %s873_s8 }
  0x12   : > { %737 = vmatprep.mubr.bf16.mxu0 %v777_v5  ;;  %v488_v7 = vld [vmem:[%s290_s13] sm:$0xff]  ;;  %500 = vperm.xlu1 %768, %v490_v6   ;;  %v489_v10 = vld [vmem:[%s290_s13 + $0x8] sm:$0xff]  ;;  %317 = vst.msk [vmem:[%s904_s30] sm:$0xff] %vm312_vm0, %v812_v15  ;;  %313 = vst.msk [vmem:[%s898_s27] sm:$0xff] %vm312_vm0, %v812_v15 }
  0x13   : > { %494 = vperm.xlu0 %767, %v488_v7   ;;  %v778_v14 = vld [vmem:[%s280_s7 + $0x8] sm:$0xff]   ;;  %318 = vst.msk [vmem:[%s904_s30 + $0x8] sm:$0xff] %vm312_vm0, %v812_v15  ;;  %314 = vst.msk [vmem:[%s898_s27 + $0x8] sm:$0xff] %vm312_vm0, %v812_v15 }
  0x14   : > { %728 = vmatpush3.bf16.msra.mxu0 %v772_v4  ;;  %319 = vst.msk [vmem:[%s904_s30 + $0x10] sm:$0xff] %vm312_vm0, %v812_v15  ;;  %315 = vst.msk [vmem:[%s898_s27 + $0x10] sm:$0xff] %vm312_vm0, %v812_v15 }
  0x15   : > { %729 = vmatprep.subr.bf16.mxu0 %v773_v8  ;;  %320 = vst.msk [vmem:[%s904_s30 + $0x18] sm:$0xff] %vm312_vm0, %v812_v15  ;;  %316 = vst.msk [vmem:[%s898_s27 + $0x18] sm:$0xff] %vm312_vm0, %v812_v15 }
  0x16   : > { %503 = vperm.xlu1 %768, %v491_v9  }
  0x17   : > { %497 = vperm.xlu0 %767, %v489_v10  }
  0x18   : > { %730 = vmatpush3.bf16.msra.mxu0 %v773_v8 }
  0x19   : > { %731 = vmatprep.subr.bf16.mxu0 %v774_v11  ;;  %v513_v49 = vld [vmem:[%s904_s30] sm:$0xff] }
  0x1a   : > { %v514_v52 = vld [vmem:[%s904_s30 + $0x8] sm:$0xff]  ;;  %v450_v59 = vld [vmem:[%s898_s27] sm:$0xff] }
  0x1b   : > { %v515_v55 = vld [vmem:[%s904_s30 + $0x10] sm:$0xff]  ;;  %v451_v63 = vld [vmem:[%s898_s27 + $0x8] sm:$0xff] }
  0x1c   : > { %732 = vmatpush3.bf16.msra.mxu0 %v774_v11  ;;  %v516_v53 = vld [vmem:[%s904_s30 + $0x18] sm:$0xff]  ;;  %v452_v1 = vld [vmem:[%s898_s27 + $0x10] sm:$0xff] }
  0x1d   : > { %733 = vmatprep.subr.bf16.mxu0 %v775_v12  ;;  %v453_v62 = vld [vmem:[%s898_s27 + $0x18] sm:$0xff] }
  0x20   : > { %734 = vmatpush3.bf16.msra.mxu0 %v775_v12 }
  0x21   : > { %735 = vmatprep.subr.bf16.mxu0 %v776_v13 }
  0x24   : > { %736 = vmatpush3.bf16.msra.mxu0 %v776_v13 }
  0x27   : > { %738 = vmatmul.mubr.bf16.vlgmr.msra.gmra.mrb[0].mxu0 %v778_v14 }
  0x91   : > { %v501_v18 = vpop.permute.xlu1 %500 }
  0x92   : > { %v495_v16 = vpop.permute.xlu0 %494  ;;  %vm511_vm1 = vcmp.eq.s32.totalorder %v501_v18, %v708_v17 }
  0x93   : > { %vm509_vm2 = vcmp.eq.s32.totalorder %v495_v16, %v708_v17 }
  0x95   : > { %v504_v40 = vpop.permute.xlu1 %503 }
  0x96   : > { %v498_v19 = vpop.permute.xlu0 %497  ;;  %vm512_vm5 = vcmp.eq.s32.totalorder %v504_v40, %v708_v17 }
  0x97   : > { %vm510_vm4 = vcmp.eq.s32.totalorder %v498_v19, %v708_v17 }
  0xfa   : > { %v739_v20 = vpop.f32.mrb[0].mxu0 }
  0xfb   : > { %v706_v21 = vadd.f32 -2.0, %v739_v20  ;;  %v435_v22 = vpop.f32.mrb[1].mxu0  ;;  %v519_v23 = vsel %vm511_vm1, %v739_v20, 0.0 }
  0xfc   : > { %v704_v24 = vadd.f32 -2.0, %v435_v22  ;;  %v740_v25 = vpop.f32.mrb[2].mxu0  ;;  %v527_v26 = vsel %vm466_vm3, %v519_v23, 0.0  ;;  %v517_v27 = vsel %vm509_vm2, %v435_v22, 0.0 }
  0xfd   : > { %v462_v28 = vmul.f32 1.442695, %v706_v21  ;;  %v707_v29 = vadd.f32 -2.0, %v740_v25  ;;  %528 = vadd.xlane.f32.xlu0 %v527_v26  ;;  %v438_v30 = vpop.f32.mrb[3].mxu0  ;;  %v521_v31 = vsel %vm466_vm3, %v517_v27, 0.0  ;;  %v520_v47 = vsel %vm512_vm5, %v740_v25, 0.0 }
  0xfe   : > { %v458_v32 = vmul.f32 1.442695, %v704_v24  ;;  %v705_v33 = vadd.f32 -2.0, %v438_v30  ;;  %v518_v34 = vsel %vm510_vm4, %v438_v30, 0.0  ;;  %522 = vadd.xlane.f32.xlu1 %v521_v31  ;;  %v530_v48 = vsel %vm466_vm3, %v520_v47, 0.0 }
  0xff   : > { %779 = vpow2.f32 %v462_v28  ;;  %v464_v35 = vmul.f32 1.442695, %v707_v29  ;;  %v524_v36 = vsel %vm466_vm3, %v518_v34, 0.0 }
 0x100   : > { %781 = vpow2.f32 %v458_v32  ;;  %v460_v37 = vmul.f32 1.442695, %v705_v33 }
 0x101   : > { %783 = vpow2.f32 %v464_v35  ;;  %525 = vadd.xlane.f32.xlu0 %v524_v36 }
 0x102   : > { %785 = vpow2.f32 %v460_v37 }
 0x109   : > { %v780_v38 = vpop.eup %779 }
 0x10a   : > { %v782_v39 = vpop.eup %781  ;;  %v473_v41 = vsel %vm466_vm3, %v780_v38, 0.0 }
 0x10b   : > { %v784_v42 = vpop.eup %783  ;;  %474 = vadd.xlane.f32.xlu1 %v473_v41  ;;  %v467_v43 = vsel %vm466_vm3, %v782_v39, 0.0 }
 0x10c   : > { %v786_v44 = vpop.eup %785  ;;  %468 = vadd.xlane.f32.xlu0 %v467_v43  ;;  %v476_v45 = vsel %vm466_vm3, %v784_v42, 0.0 }
 0x10d   : > { %v470_v46 = vsel %vm466_vm3, %v786_v44, 0.0 }
 0x10f   : > { %477 = vadd.xlane.f32.xlu1 %v476_v45 }
 0x110   : > { %471 = vadd.xlane.f32.xlu0 %v470_v46 }
 0x114   : > { %531 = vadd.xlane.f32.xlu0 %v530_v48 }
 0x18a   : > { %v529_v50 = vpop.xlane.xlu0 %528 }
 0x18b   : > { %v523_v51 = vpop.xlane.xlu1 %522  ;;  %v535_v58 = vadd.f32 %v529_v50, %v515_v55 }
 0x18c   : > { %v533_v54 = vadd.f32 %v523_v51, %v513_v49 }
 0x18d   : > { %539 = vst.msk [vmem:[%s904_s30 + $0x10] sm:$0xff] %vm312_vm0, %v535_v58 }
 0x18e   : > { %v526_v56 = vpop.xlane.xlu0 %525  ;;  %537 = vst.msk [vmem:[%s904_s30] sm:$0xff] %vm312_vm0, %v533_v54 }
 0x18f   : > { %v534_v57 = vadd.f32 %v526_v56, %v514_v52 }
 0x191   : > { %538 = vst.msk [vmem:[%s904_s30 + $0x8] sm:$0xff] %vm312_vm0, %v534_v57 }
 0x198   : > { %v475_v60 = vpop.xlane.xlu1 %474 }
 0x199   : > { %v469_v61 = vpop.xlane.xlu0 %468  ;;  %v481_v5 = vadd.f32 %v475_v60, %v452_v1 }
 0x19a   : > { %v479_v0 = vadd.f32 %v469_v61, %v450_v59 }
 0x19b   : > { %486 = vst.msk [vmem:[%s898_s27 + $0x10] sm:$0xff] %vm312_vm0, %v481_v5 }
 0x19c   : > { %484 = vst.msk [vmem:[%s898_s27] sm:$0xff] %vm312_vm0, %v479_v0  ;;  %v478_v2 = vpop.xlane.xlu1 %477 }
 0x19d   : > { %v472_v3 = vpop.xlane.xlu0 %471  ;;  %v482_v6 = vadd.f32 %v478_v2, %v453_v62 }
 0x19e   : > { %v480_v4 = vadd.f32 %v472_v3, %v451_v63 }
 0x19f   : > { %487 = vst.msk [vmem:[%s898_s27 + $0x18] sm:$0xff] %vm312_vm0, %v482_v6 }
 0x1a0   : > { %485 = vst.msk [vmem:[%s898_s27 + $0x8] sm:$0xff] %vm312_vm0, %v480_v4 }
 0x1a1   : > { %v532_v7 = vpop.xlane.xlu0 %531 }
 0x1a2   : > { %v536_v8 = vadd.f32 %v532_v7, %v516_v53 }
 0x1a4   : > { %540 = vst.msk [vmem:[%s904_s30 + $0x18] sm:$0xff] %vm312_vm0, %v536_v8 }
 0x1a5 PF: > { %s16_s20 = sadd.s32 1, %s809_s20   ;;  %s972_s18 = smov %s805_s19 }
 0x1a6   : > { %p13_p5 = scmp.ge.s32.totalorder %s16_s20, 4   ;;  %s973_s19 = smov %s975_s21 }
 0x1a8   :  { %15 = sbr.rel (!%p13_p5) target bundleno = 2 (0x2), region = 91 }

</bundles_post_ra>
